<compile_context>
chip_gen: v7x
topology: tpu7x:2x2x1
jax: 0.10.0
libtpu: 0.0.40
codegen_flags: <defaults>
</compile_context>

<pallas_src>
import jax
import jax.numpy as jnp
from jax import lax
from jax.experimental import pallas as pl
from jax.experimental.pallas import tpu as pltpu


# ----------------------------- Pallas kernel ---------------------------------
def decoders_kernel(feat_ref, cfeat_ref, w0s_ref, w0c_ref, w1_ref, wo_ref,
                    b_ref, out_ref):
    # feat_ref / cfeat_ref : (C, T)  bf16   -- transposed features (lanes = batch)
    # w0s_ref / w0c_ref    : (2H, C) bf16   -- layer0, sdf rows 0:H / rgb rows H:2H
    # w1_ref               : (2H, 2H) f32   -- layer1, block-diagonal
    # wo_ref               : (4, 2H) f32    -- output layer (rows 0:3 rgb, row 3 sdf)
    # b_ref                : (2H, 4) f32    -- packed biases (cols 0,1,2 used)
    # out_ref              : (4, T)  f32
    b = b_ref[...]
    b0 = b[:, 0:1]                      # (2H, 1), broadcast over lanes
    b1 = b[:, 1:2]
    bo = b[0:4, 2:3]                    # (4, 1)

    # Layer 0: two bf16 MXU dots accumulated into the fused hidden state.
    # (W0s is zero on the rgb rows and W0c on the sdf rows, so the sum is exact.)
    h = jnp.dot(w0s_ref[...], feat_ref[...], preferred_element_type=jnp.float32)
    h = h + jnp.dot(w0c_ref[...], cfeat_ref[...],
                    preferred_element_type=jnp.float32)
    h = jnp.maximum(h + b0, 0.0)        # (2H, T) f32

    # Layer 1: fused block-diagonal.
    h = jnp.dot(w1_ref[...], h, preferred_element_type=jnp.float32)
    h = jnp.maximum(h + b1, 0.0)

    # Output layer: (4, 2H) @ (2H, T) -> (4, T).
    y = jnp.dot(wo_ref[...], h, preferred_element_type=jnp.float32) + bo

    # Lane-dense stores: sigmoid on everything (rgb rows), overwrite sdf row
    # with tanh (avoids the iota/compare/select and the double transcendental
    # over the whole tile).
    out_ref[...] = jax.nn.sigmoid(y)
    out_ref[3:4, :] = jnp.tanh(y[3:4, :])


# ----------------------------- parameter fusion -------------------------------
def pack_params(params, c_dim, hidden_size):
    """Pack the 12 nn.Linear tensors into transposed, fused decoder weights."""
    (w0, b0, w1, b1, wo, bo, cw0, cb0, cw1, cb1, cwo, cbo) = params
    C, H = c_dim, hidden_size
    H2 = 2 * H

    # Layer 0, transposed, split per input (bf16 for the bf16 MXU path).
    w0s_t = jnp.zeros((H2, C), jnp.float32).at[:H, :].set(w0.T).astype(jnp.bfloat16)
    w0c_t = jnp.zeros((H2, C), jnp.float32).at[H:, :].set(cw0.T).astype(jnp.bfloat16)

    # Layer 1, transposed block-diagonal (f32 -- hidden state stays f32).
    w1f_t = jnp.zeros((H2, H2), jnp.float32)
    w1f_t = w1f_t.at[:H, :H].set(w1.T).at[H:, H:].set(cw1.T)

    # Output layer: rows 0:3 <- rgb head (reads the rgb half of h),
    #               row  3   <- sdf head (reads the sdf half of h).
    wof_t = jnp.zeros((4, H2), jnp.float32)
    wof_t = wof_t.at[0:3, H:].set(cwo.T).at[3:4, :H].set(wo.T)

    # Packed biases: col 0 = layer0, col 1 = layer1, col 2 rows 0:4 = [rgb|sdf].
    bias = jnp.zeros((H2, 4), jnp.float32)
    bias = bias.at[:, 0].set(jnp.concatenate([b0[0], cb0[0]]))
    bias = bias.at[:, 1].set(jnp.concatenate([b1[0], cb1[0]]))
    bias = bias.at[0:4, 2].set(jnp.concatenate([cbo[0], bo[0]]))

    return w0s_t, w0c_t, w1f_t, wof_t, bias


# ------------------------------- wrapper --------------------------------------
def _round_up(x, m):
    return ((x + m - 1) // m) * m


def run_decoders_kernel(feat_t, c_feat_t, fused_params, *, tile_n=2048):
    """feat_t, c_feat_t: (C, N) bf16 (transposed features).

    Returns (4, N) f32: rows 0:3 = raw rgb (sigmoid), row 3 = raw sdf (tanh).
    """
    C, N = feat_t.shape
    w0s_t, w0c_t, w1f_t, wof_t, bias = fused_params

    # Lane tile must be a multiple of 128; don't over-tile tiny problems.
    # (On v7x, prefer a tile_n that keeps grid >= 2 so both TCs are used.)
    tile_n = max(128, min(tile_n, _round_up(N, 128)))
    assert tile_n % 128 == 0

    grid = (pl.cdiv(N, tile_n),)  # ragged tail handled by Pallas masking

    def resident(arr):
        return pl.BlockSpec(arr.shape, lambda i: (0, 0))

    out = pl.pallas_call(
        decoders_kernel,
        out_shape=jax.ShapeDtypeStruct((4, N), jnp.float32),
        grid=grid,
        in_specs=[
            pl.BlockSpec((C, tile_n), lambda i: (0, i)),   # feat^T
            pl.BlockSpec((C, tile_n), lambda i: (0, i)),   # c_feat^T
            resident(w0s_t), resident(w0c_t), resident(w1f_t),
            resident(wof_t), resident(bias),
        ],
        out_specs=pl.BlockSpec((4, tile_n), lambda i: (0, i)),
        compiler_params=pltpu.CompilerParams(
            dimension_semantics=("parallel",)),
    )(feat_t, c_feat_t, w0s_t, w0c_t, w1f_t, wof_t, bias)

    return out


# ----------------------- plain-JAX glue (feature sampling) -------------------
def trilinear_sample_t(grid_t, p_nor):
    """Dense stand-in for a tcnn hash-grid encoder, emitting kernel layout.

    grid_t: [C, G, G, G] feature grid; p_nor: [N, 3] normalized coordinates.
    Returns [C, N] bf16 (transposed + narrowed, so the kernel reads it directly).
    """
    # TODO(synk): true tcnn HashGrid (multi-res hash-table lookup) has no clean
    # Pallas equivalent; a dense trilinear feature grid is used instead.
    p = jnp.clip(p_nor, 0.0, 1.0)
    G = grid_t.shape[1]
    xyz = p * (G - 1)
    i0 = jnp.clip(jnp.floor(xyz).astype(jnp.int32), 0, G - 2)
    f = (xyz - i0.astype(jnp.float32)).T            # (3, N)
    i1 = i0 + 1

    x0, y0, z0 = i0[:, 0], i0[:, 1], i0[:, 2]
    x1, y1, z1 = i1[:, 0], i1[:, 1], i1[:, 2]
    fx, fy, fz = f[0:1], f[1:2], f[2:3]             # (1, N) each

    def g(ix, iy, iz):
        return grid_t[:, ix, iy, iz]                # (C, N)

    c00 = g(x0, y0, z0) * (1 - fx) + g(x1, y0, z0) * fx
    c10 = g(x0, y1, z0) * (1 - fx) + g(x1, y1, z0) * fx
    c01 = g(x0, y0, z1) * (1 - fx) + g(x1, y0, z1) * fx
    c11 = g(x0, y1, z1) * (1 - fx) + g(x1, y1, z1) * fx
    c0 = c00 * (1 - fy) + c10 * fy
    c1 = c01 * (1 - fy) + c11 * fy
    out = c0 * (1 - fz) + c1 * fz                   # (C, N) f32
    return out.astype(jnp.bfloat16)


# ------------------------------ reference MLP --------------------------------
def decoders_reference(feat, c_feat, params):
    """Pure-JAX Decoders MLP reference, (N, C) layout, f32 math."""
    (w0, b0, w1, b1, wo, bo, cw0, cb0, cw1, cb1, cwo, cbo) = params
    hp = lax.Precision.HIGHEST
    h = jnp.maximum(jnp.dot(feat, w0, precision=hp) + b0, 0.0)
    h = jnp.maximum(jnp.dot(h, w1, precision=hp) + b1, 0.0)
    sdf = jnp.tanh(jnp.dot(h, wo, precision=hp) + bo)
    hc = jnp.maximum(jnp.dot(c_feat, cw0, precision=hp) + cb0, 0.0)
    hc = jnp.maximum(jnp.dot(hc, cw1, precision=hp) + cb1, 0.0)
    rgb = jax.nn.sigmoid(jnp.dot(hc, cwo, precision=hp) + cbo)
    return jnp.concatenate([rgb, sdf], axis=-1)


# ----------------------------- parameter setup -------------------------------
def init_params(key, c_dim=32, hidden_size=16):
    """Deterministic init matching the nn.Linear shapes of Decoders
    (hash_grid mode: input_channels = c_dim, n_blocks = 2)."""
    ks = jax.random.split(key, 6)

    def lin(k, fan_in, fan_out):
        bound = 1.0 / jnp.sqrt(jnp.float32(fan_in))
        kw, kb = jax.random.split(k)
        w = jax.random.uniform(kw, (fan_in, fan_out), jnp.float32, -bound, bound)
        b = jax.random.uniform(kb, (1, fan_out), jnp.float32, -bound, bound)
        return w, b

    w0, b0 = lin(ks[0], c_dim, hidden_size)          # linears[0]
    w1, b1 = lin(ks[1], hidden_size, hidden_size)    # linears[1]
    wo, bo = lin(ks[2], hidden_size, 1)              # output_linear
    cw0, cb0 = lin(ks[3], c_dim, hidden_size)        # c_linears[0]
    cw1, cb1 = lin(ks[4], hidden_size, hidden_size)  # c_linears[1]
    cwo, cbo = lin(ks[5], hidden_size, 3)            # c_output_linear
    return (w0, b0, w1, b1, wo, bo, cw0, cb0, cw1, cb1, cwo, cbo)


def _bf16_round(x):
    return x.astype(jnp.bfloat16).astype(jnp.float32)


# ---------------------------------- main --------------------------------------
if __name__ == "__main__":
    key = jax.random.PRNGKey(0)
    k_p, k_grid, k_cgrid, k_params = jax.random.split(key, 4)

    c_dim = 32
    hidden_size = 16
    G = 8                       # dense feature-grid resolution (hash-grid stand-in)
    p_shape = (2, 500, 3)       # rays x samples x xyz -> N = 1000 (exercises ragged tail)

    # 3D coordinates (some slightly outside [0,1] to exercise the clamp)
    p = jax.random.uniform(k_p, p_shape, jnp.float32, -0.1, 1.1)
    p_nor = p.reshape(-1, 3)

    # scene_rep stand-in: (sdf feature grid, color feature grid), channel-major.
    hash_grid_t = 0.1 * jax.random.normal(k_grid, (c_dim, G, G, G), jnp.float32)
    c_hash_grid_t = 0.1 * jax.random.normal(k_cgrid, (c_dim, G, G, G), jnp.float32)

    params = init_params(k_params, c_dim=c_dim, hidden_size=hidden_size)
    fused_params = pack_params(params, c_dim, hidden_size)

    # Feature sampling (glue, plain JAX) -> (C, N) bf16, ready for the kernel.
    feat_t = trilinear_sample_t(hash_grid_t, p_nor)
    c_feat_t = trilinear_sample_t(c_hash_grid_t, p_nor)

    # Decoder MLPs + activations + concat (Pallas kernel).
    # tile_n=512 keeps grid=2 at this small N (multi-step grid + ragged tail).
    raw_t = run_decoders_kernel(feat_t, c_feat_t, fused_params, tile_n=512)
    raw = jnp.transpose(raw_t).reshape(*p_shape[:-1], 4)   # module layout [rgb, sdf]
    jax.block_until_ready(raw)

    # Correctness check: reference sees the same bf16-rounded features and
    # bf16-rounded layer-0 weights the kernel uses; everything else is f32.
    feat_f = feat_t.astype(jnp.float32).T
    c_feat_f = c_feat_t.astype(jnp.float32).T
    params_ref = list(params)
    params_ref[0] = _bf16_round(params[0])    # w0
    params_ref[6] = _bf16_round(params[6])    # cw0
    ref = decoders_reference(feat_f, c_feat_f, tuple(params_ref))
    ref = ref.reshape(*p_shape[:-1], 4)

    assert raw.shape == (*p_shape[:-1], 4)
    assert jnp.allclose(raw, ref, atol=5e-3, rtol=5e-3), "mismatch vs reference"

    print("KERNEL_OK")
</pallas_src>

<mosaic_0001>
module attributes {stable_mosaic.version = 11 : i64} {
  func.func @decoders_kernel(%arg0: i32, %arg1: memref<32x512xbf16, #tpu.memory_space<vmem>>, %arg2: memref<32x512xbf16, #tpu.memory_space<vmem>>, %arg3: memref<32x32xbf16, #tpu.memory_space<vmem>>, %arg4: memref<32x32xbf16, #tpu.memory_space<vmem>>, %arg5: memref<32x32xf32, #tpu.memory_space<vmem>>, %arg6: memref<4x32xf32, #tpu.memory_space<vmem>>, %arg7: memref<32x4xf32, #tpu.memory_space<vmem>>, %arg8: memref<4x512xf32, #tpu.memory_space<vmem>>) attributes {dimension_semantics = [#tpu.dimension_semantics<parallel>], iteration_bounds = array<i64: 2>, scalar_prefetch = 0 : i64, scratch_operands = 0 : i64, tpu.core_type = #tpu.core_type<tc>, window_params = [{transform_indices = @transform_0, window_bounds = array<i64: 32, 512>}, {transform_indices = @transform_1, window_bounds = array<i64: 32, 512>}, {pipeline_mode = #tpu.pipeline_mode<synchronous>, transform_indices = @transform_2, window_bounds = array<i64: 32, 32>}, {pipeline_mode = #tpu.pipeline_mode<synchronous>, transform_indices = @transform_3, window_bounds = array<i64: 32, 32>}, {pipeline_mode = #tpu.pipeline_mode<synchronous>, transform_indices = @transform_4, window_bounds = array<i64: 32, 32>}, {pipeline_mode = #tpu.pipeline_mode<synchronous>, transform_indices = @transform_5, window_bounds = array<i64: 4, 32>}, {pipeline_mode = #tpu.pipeline_mode<synchronous>, transform_indices = @transform_6, window_bounds = array<i64: 32, 4>}, {transform_indices = @transform_7, window_bounds = array<i64: 4, 512>}]} {
    %c0 = arith.constant 0 : index
    %c0_0 = arith.constant 0 : index
    %0 = vector.load %arg7[%c0, %c0_0] : memref<32x4xf32, #tpu.memory_space<vmem>>, vector<32x4xf32>
    %1 = vector.extract_strided_slice %0 {offsets = [0, 0], sizes = [32, 1], strides = [1, 1]} : vector<32x4xf32> to vector<32x1xf32>
    %2 = vector.extract_strided_slice %0 {offsets = [0, 1], sizes = [32, 1], strides = [1, 1]} : vector<32x4xf32> to vector<32x1xf32>
    %3 = vector.extract_strided_slice %0 {offsets = [0, 2], sizes = [4, 1], strides = [1, 1]} : vector<32x4xf32> to vector<4x1xf32>
    %c0_1 = arith.constant 0 : index
    %c0_2 = arith.constant 0 : index
    %4 = vector.load %arg3[%c0_1, %c0_2] : memref<32x32xbf16, #tpu.memory_space<vmem>>, vector<32x32xbf16>
    %c0_3 = arith.constant 0 : index
    %c0_4 = arith.constant 0 : index
    %5 = vector.load %arg1[%c0_3, %c0_4] : memref<32x512xbf16, #tpu.memory_space<vmem>>, vector<32x512xbf16>
    %cst = arith.constant dense<0.000000e+00> : vector<32x512xf32>
    %6 = tpu.matmul %4, %5, %cst {dimension_numbers = #tpu.dot_dimension_numbers<[1], [0], [0], [1], [0, 0, 1, 1], [], []>} : vector<32x32xbf16>, vector<32x512xbf16>, vector<32x512xf32> -> vector<32x512xf32>
    %c0_5 = arith.constant 0 : index
    %c0_6 = arith.constant 0 : index
    %7 = vector.load %arg4[%c0_5, %c0_6] : memref<32x32xbf16, #tpu.memory_space<vmem>>, vector<32x32xbf16>
    %c0_7 = arith.constant 0 : index
    %c0_8 = arith.constant 0 : index
    %8 = vector.load %arg2[%c0_7, %c0_8] : memref<32x512xbf16, #tpu.memory_space<vmem>>, vector<32x512xbf16>
    %cst_9 = arith.constant dense<0.000000e+00> : vector<32x512xf32>
    %9 = tpu.matmul %7, %8, %cst_9 {dimension_numbers = #tpu.dot_dimension_numbers<[1], [0], [0], [1], [0, 0, 1, 1], [], []>} : vector<32x32xbf16>, vector<32x512xbf16>, vector<32x512xf32> -> vector<32x512xf32>
    %10 = arith.addf %6, %9 : vector<32x512xf32>
    %11 = vector.broadcast %1 : vector<32x1xf32> to vector<32x512xf32>
    %12 = arith.addf %10, %11 : vector<32x512xf32>
    %cst_10 = arith.constant 0.000000e+00 : f32
    %13 = vector.broadcast %cst_10 : f32 to vector<32x512xf32>
    %14 = arith.maximumf %12, %13 : vector<32x512xf32>
    %c0_11 = arith.constant 0 : index
    %c0_12 = arith.constant 0 : index
    %15 = vector.load %arg5[%c0_11, %c0_12] : memref<32x32xf32, #tpu.memory_space<vmem>>, vector<32x32xf32>
    %cst_13 = arith.constant dense<0.000000e+00> : vector<32x512xf32>
    %16 = tpu.matmul %15, %14, %cst_13 {dimension_numbers = #tpu.dot_dimension_numbers<[1], [0], [0], [1], [0, 0, 1, 1], [], []>} : vector<32x32xf32>, vector<32x512xf32>, vector<32x512xf32> -> vector<32x512xf32>
    %17 = vector.broadcast %2 : vector<32x1xf32> to vector<32x512xf32>
    %18 = arith.addf %16, %17 : vector<32x512xf32>
    %cst_14 = arith.constant 0.000000e+00 : f32
    %19 = vector.broadcast %cst_14 : f32 to vector<32x512xf32>
    %20 = arith.maximumf %18, %19 : vector<32x512xf32>
    %c0_15 = arith.constant 0 : index
    %c0_16 = arith.constant 0 : index
    %21 = vector.load %arg6[%c0_15, %c0_16] : memref<4x32xf32, #tpu.memory_space<vmem>>, vector<4x32xf32>
    %cst_17 = arith.constant dense<0.000000e+00> : vector<4x512xf32>
    %22 = tpu.matmul %21, %20, %cst_17 {dimension_numbers = #tpu.dot_dimension_numbers<[1], [0], [0], [1], [0, 0, 1, 1], [], []>} : vector<4x32xf32>, vector<32x512xf32>, vector<4x512xf32> -> vector<4x512xf32>
    %23 = vector.broadcast %3 : vector<4x1xf32> to vector<4x512xf32>
    %24 = arith.addf %22, %23 : vector<4x512xf32>
    %25 = arith.negf %24 : vector<4x512xf32>
    %26 = math.exp %25 : vector<4x512xf32>
    %cst_18 = arith.constant 1.000000e+00 : f32
    %27 = vector.broadcast %cst_18 : f32 to vector<4x512xf32>
    %28 = arith.addf %27, %26 : vector<4x512xf32>
    %29 = arith.divf %27, %28 : vector<4x512xf32>
    %c0_19 = arith.constant 0 : index
    %c0_20 = arith.constant 0 : index
    %30 = vector.load %arg8[%c0_19, %c0_20] : memref<4x512xf32, #tpu.memory_space<vmem>>, vector<4x512xf32>
    tpu.vector_store %arg8[%c0_19, %c0_20], %29 {strides = array<i32>} : memref<4x512xf32, #tpu.memory_space<vmem>>, vector<4x512xf32>,
    %31 = vector.extract_strided_slice %24 {offsets = [3, 0], sizes = [1, 512], strides = [1, 1]} : vector<4x512xf32> to vector<1x512xf32>
    %32 = math.tanh %31 : vector<1x512xf32>
    %c3 = arith.constant 3 : index
    %c0_21 = arith.constant 0 : index
    %33 = vector.load %arg8[%c3, %c0_21] : memref<4x512xf32, #tpu.memory_space<vmem>>, vector<1x512xf32>
    tpu.vector_store %arg8[%c3, %c0_21], %32 {strides = array<i32>} : memref<4x512xf32, #tpu.memory_space<vmem>>, vector<1x512xf32>,
    return
  }
  func.func @transform_0(%arg0: i32) -> (i32, i32) {
    %c0_i32 = arith.constant 0 : i32
    %c0_i32_0 = arith.constant 0 : i32
    return %c0_i32, %arg0 : i32, i32
  }
  func.func @transform_1(%arg0: i32) -> (i32, i32) {
    %c0_i32 = arith.constant 0 : i32
    %c0_i32_0 = arith.constant 0 : i32
    return %c0_i32, %arg0 : i32, i32
  }
  func.func @transform_2(%arg0: i32) -> (i32, i32) {
    %c0_i32 = arith.constant 0 : i32
    %c0_i32_0 = arith.constant 0 : i32
    %c0_i32_1 = arith.constant 0 : i32
    return %c0_i32, %c0_i32_0 : i32, i32
  }
  func.func @transform_3(%arg0: i32) -> (i32, i32) {
    %c0_i32 = arith.constant 0 : i32
    %c0_i32_0 = arith.constant 0 : i32
    %c0_i32_1 = arith.constant 0 : i32
    return %c0_i32, %c0_i32_0 : i32, i32
  }
  func.func @transform_4(%arg0: i32) -> (i32, i32) {
    %c0_i32 = arith.constant 0 : i32
    %c0_i32_0 = arith.constant 0 : i32
    %c0_i32_1 = arith.constant 0 : i32
    return %c0_i32, %c0_i32_0 : i32, i32
  }
  func.func @transform_5(%arg0: i32) -> (i32, i32) {
    %c0_i32 = arith.constant 0 : i32
    %c0_i32_0 = arith.constant 0 : i32
    %c0_i32_1 = arith.constant 0 : i32
    return %c0_i32, %c0_i32_0 : i32, i32
  }
  func.func @transform_6(%arg0: i32) -> (i32, i32) {
    %c0_i32 = arith.constant 0 : i32
    %c0_i32_0 = arith.constant 0 : i32
    %c0_i32_1 = arith.constant 0 : i32
    return %c0_i32, %c0_i32_0 : i32, i32
  }
  func.func @transform_7(%arg0: i32) -> (i32, i32) {
    %c0_i32 = arith.constant 0 : i32
    %c0_i32_0 = arith.constant 0 : i32
    return %c0_i32, %arg0 : i32, i32
  }
}

</mosaic_0001>

<bundles_post_ra>
// kernel: tpu_custom_call.1
= control target key start
LH: loop header
LB: loop body
LE: loop exit
PB: predicated region body
PF: predicated region fallthrough
CT: control target
= control target key end

     0   :  { %s2117_s0 = inlined_call_operand.hbm [shape: bf16[32,1000], index: 0, kind: input, shape index: {}]   ;;  %s2118_s1 = inlined_call_operand.hbm [shape: bf16[32,1000], index: 1, kind: input, shape index: {}]   ;;  %s2119_s2 = inlined_call_operand.vmem [shape: bf16[32,32], index: 2, kind: input, shape index: {}]   ;;  %s2120_s3 = inlined_call_operand.hbm [shape: bf16[32,32], index: 3, kind: input, shape index: {}]   ;;  %s2121_s4 = inlined_call_operand.vmem [shape: f32[32,32], index: 4, kind: input, shape index: {}]   ;;  %s2122_s5 = inlined_call_operand.vmem [shape: f32[4,32], index: 5, kind: input, shape index: {}]   ;;  %s2123_s6 = inlined_call_operand.vmem [shape: f32[32,4], index: 6, kind: input, shape index: {}]   ;;  %s2124_s7 = inlined_call_operand.hbm [shape: f32[4,1000], index: 7, kind: output, shape index: {}]  }
   0x1   :  { %2133 = sst [smem:[#allocation16_spill]] %s2117_s0 }
   0x2   :  { %2134 = sst [smem:[#allocation17_spill]] %s2120_s3 }
   0x3   :  { %12 = vsyncpa [#allocation3], 0 }
   0x4   :  { %14 = vsyncpa [#allocation3 + $0x1], 0 }
   0x5   :  { %15 = vsyncpa [#allocation6], 0 }
   0x6   :  { %17 = vsyncpa [#allocation6 + $0x1], 0 }
   0x7   :  { %18 = vsyncpa [#allocation4], 0 }
   0x8   :  { %20 = vsyncpa [#allocation4 + $0x1], 0  ;;  %s1789_s24 = smov 0   ;;  %s1791_s25 = smov 0  }
   0x9   :  { %s1793_s26 = smov 0   ;;  %s1795_s27 = smov 0  }
   0xa LB: > { %2135 = sst [smem:[#allocation13_spill]] %s1729_s26  ;;  %s1810_s28 = sadd.s32 4294967295, %s1733_s27   ;;  %s1733_s27 = sphi %s1795_s27, %s2157_s27   ;;  %s1729_s26 = sphi %s1793_s26, %s2159_s26   ;;  %s1725_s25 = sphi %s1791_s25, %s2161_s25   ;;  %s1721_s24 = sphi %s1789_s24, %s2160_s24  }
   0xb   : > { %s1327_s29 = sadd.s32 4294967294, %s1733_s27   ;;  %s1814_s30 = sadd.s32 1, %s1733_s27  }
   0xc   : > { %2136 = sst [smem:[#allocation14_spill]] %s1814_s30  ;;  %s33_s8 = sadd.s32 1, %s1729_s26 }
   0xd   : > { %s30_s9 = ssub.s32 %s1733_s27, %s1814_s30  ;;  %p40_p0 = scmp.ne.s32.totalorder %s1729_s26, %s1725_s25 }
   0xe   : > { %p31_p1 = scmp.eq.s32.totalorder %s30_s9, 0  ;;  %p41_p2 = scmp.eq.s32.totalorder %s1733_s27, 0 }
   0xf   : > { %p46_p3 = scmp.ne.s32.totalorder %s1725_s25, %s1721_s24  ;;  %p2125_p4 = scmp.eq.s32.totalorder %s1810_s28, 0 }
  0x10   : > { %s1826_s10 = scalar_select %p31_p1, %s1729_s26, %s33_s8  }
  0x11   : > { %p1828_p5 = por %p41_p2, %p40_p0  ;;  %p1834_p6 = por %p2125_p4, %p46_p3 }
  0x12   : > { %2137 = sst [smem:[#allocation15_spill]] %s1826_s10  ;;  %p201_p7 = scmp.eq.s32.totalorder %s1810_s28, 1 }
  0x13   : > { %s2138_s11 = scalar_select %p1828_p5, 1, 0 }
  0x14   : > { %s2139_s12 = scalar_select %p1834_p6, 1, 0 }
  0x15   : > { %p207_p8 = scmp.eq.s32.totalorder %s1327_s29, 1  ;;  %p1328_p9 = scmp.ge.s32.totalorder %s1733_s27, 1 }
  0x16   : > { %p214_p10 = scmp.lt.s32.totalorder %s1733_s27, 3  ;;  %p1841_p11 = por %p201_p7, %p40_p0 }
  0x17   : > { %p1845_p12 = por %p207_p8, %p46_p3  ;;  %s1735_s16 = smov [#allocation7]  }
  0x18   : > { %s2140_s13 = scalar_select %p1841_p11, 1, 0 }
  0x19   : > { %s2141_s14 = scalar_select %p1845_p12, 1, 0 }
  0x1a   : > { %p1849_p13 = pnand %p1328_p9, %p214_p10  ;;  %s229_s17 = sshll.u32 %s1735_s16, 4  ;;  %s230_s17 = int_to_ptr.vmem [resolvable:$true] %s229_s17 }
  0x1b   : > { %s252_s19 = sand.u32 1, %s1729_s26   ;;  %s2144_s3 = sld [smem:[#allocation17_spill]] }
  0x1c   : > { %s2142_s15 = scalar_select %p1849_p13, 1, 0 }
  0x1d   : > { %p1451_p1 = pneg %p1849_p13 }
  0x1f   : > { %p1857_p2 = pnand %p1451_p1, %p2125_p4 }
  0x21   : > { %s1571_s22 = scalar_lea.hbm %s2144_s3, 256  ;;  %p1573_p8 = pneg %p1857_p2 }
  0x22   : > { %p1572_p7 = scmp.ne.s32.totalorder %s2144_s3, %s1571_s22  ;;  %p1578_p1 = scmp.lt.u32.totalorder %s1571_s22, %s2144_s3 }
  0x24   : > { %p1574_p9 = pnand %p1573_p8, %p1572_p7 }
  0x26   : > { %p1575_p10 = pneg %p1574_p9 }
  0x28   : > { %p1580_p4 = pnand %p1578_p1, %p1575_p10 }
  0x2a   : > { %1583 = shalt.err (!%p1580_p4)
}
  0x2b   : > { %s1584_s16 = scalar_lea.vmem %s230_s17, 256  ;;  %p1592_p11 = scmp.lt.s32.totalorder %s230_s17, %s230_s17 }
  0x2c   : > { %p1585_p0 = scmp.ne.s32.totalorder %s230_s17, %s1584_s16  ;;  %p1593_p6 = scmp.lt.s32.totalorder %s1584_s16, %s1584_s16 }
  0x2e   : > { %p1587_p3 = pnand %p1585_p0, %p1573_p8  ;;  %p1594_p13 = por %p1593_p6, %p1592_p11 }
  0x30   : > { %p1588_p12 = pneg %p1587_p3 }
  0x32   : > { %p1595_p5 = pnand %p1594_p13, %p1588_p12 }
  0x34   : > { %1598 = shalt.err (!%p1595_p5)
}
  0x35   : > { %s1736_s20 = smov 64   ;;  %s1737_s21 = smov 4  }
  0x36   : > { %1454 = dma.hbm_to_vmem [thread:$0]  (!%p1857_p2), %s2144_s3, 256, %s230_s17, [#allocation6], %s1736_s20, %s1736_s20, %s1737_s21  }
  0x37   : > { %p2145_p4 = scmp.ne.s32.totalorder %s2138_s11, 0  ;;  %p2146_p0 = scmp.lt.s32.totalorder %s1733_s27, 2 }
  0x38   : > { %s1888_s8 = sshll.u32 %s252_s19, 6  ;;  %s2129_s9 = sshll.u32 %s1733_s27, 8 }
  0x39   : > { %p1884_p3 = pnand %p2146_p0, %p2145_p4  ;;  %s2148_s0 = sld [smem:[#allocation16_spill]] }
  0x3a   : > { %s256_s11 = scalar_lea.vmem [#allocation2], %s1888_s8  ;;  %s1901_s20 = scalar_lea.sflag [#allocation3], %s252_s19 }
  0x3b   : > { %s263_s17 = sshll.u32 %s256_s11, 4  ;;  %p1601_p6 = pneg %p1884_p3  ;;  %s1899_s17 = int_to_ptr.vmem [resolvable:$true] %s263_s17 }
  0x3f   : > { %s1896_s18 = scalar_lea.hbm %s2148_s0, %s2129_s9  ;;  %s1604_s23 = scalar_lea.hbm %s2148_s0, 2048 }
  0x40   : > { %s1599_s21 = scalar_lea.hbm %s1896_s18, 1024  ;;  %p1605_p13 = scmp.lt.u32.totalorder %s1896_s18, %s2148_s0 }
  0x41   : > { %p1600_p5 = scmp.ne.s32.totalorder %s1896_s18, %s1599_s21  ;;  %p1606_p2 = scmp.lt.u32.totalorder %s1604_s23, %s1599_s21 }
  0x42   : > { %p1608_p8 = scmp.lt.u32.totalorder %s1599_s21, %s1896_s18 }
  0x43   : > { %p1602_p11 = pnand %p1601_p6, %p1600_p5  ;;  %p1607_p7 = por %p1606_p2, %p1605_p13 }
  0x45   : > { %p1603_p12 = pneg %p1602_p11  ;;  %p1609_p9 = por %p1608_p8, %p1607_p7 }
  0x47   : > { %p1610_p10 = pnand %p1609_p9, %p1603_p12 }
  0x49   : > { %1613 = shalt.err (!%p1610_p10)
}
  0x4a   : > { %s1614_s19 = scalar_lea.vmem %s1899_s17, 1024  ;;  %s1738_s11 = smov [#allocation2]  }
  0x4b   : > { %p1615_p1 = scmp.ne.s32.totalorder %s1899_s17, %s1614_s19  ;;  %s1619_s10 = sshll.u32 %s1738_s11, 4  ;;  %s1620_s10 = int_to_ptr.vmem [resolvable:$false] %s1619_s10 }
  0x4c   : > { %s1621_s9 = scalar_lea.vmem %s1620_s10, 2048  ;;  %p1622_p5 = scmp.lt.s32.totalorder %s1899_s17, %s1620_s10 }
  0x4d   : > { %p1617_p4 = pnand %p1615_p1, %p1601_p6  ;;  %p1623_p11 = scmp.lt.s32.totalorder %s1621_s9, %s1614_s19 }
  0x4f   : > { %p1618_p0 = pneg %p1617_p4  ;;  %p1624_p13 = por %p1623_p11, %p1622_p5 }
  0x51   : > { %p1625_p2 = pnand %p1624_p13, %p1618_p0 }
  0x53   : > { %1628 = shalt.err (!%p1625_p2)
}
  0x54   : > { %s1739_s21 = smov 512   ;;  %s1740_s22 = smov 256  }
  0x55   : > { %s1741_s23 = smov 16   ;;  %s2149_s16 = sshll.u32 %s1733_s27, 8 }
  0x56   : > { %1458 = dma.hbm_to_vmem [thread:$0]  (!%p1884_p3), %s1896_s18, 1024, %s1899_s17, %s1901_s20, %s1739_s21, %s1740_s22, %s1741_s23  }
  0x57   : > { %s1937_s10 = scalar_lea.hbm %s2118_s1, %s2149_s16  ;;  %s277_s9 = scalar_lea.vmem [#allocation5], %s1888_s8 }
  0x58   : > { %s284_s0 = sshll.u32 %s277_s9, 4  ;;  %s273_s3 = sand.u32 1, %s1733_s27   ;;  %s1940_s0 = int_to_ptr.vmem [resolvable:$true] %s284_s0 }
  0x59   : > { %s1943_s26 = scalar_lea.sflag [#allocation6], %s273_s3  ;;  %s1629_s30 = scalar_lea.hbm %s1937_s10, 1024 }
  0x5a   : > { %p1630_p12 = scmp.ne.s32.totalorder %s1937_s10, %s1629_s30  ;;  %s1634_s20 = scalar_lea.hbm %s2118_s1, 2048 }
  0x5b   : > { %p1635_p9 = scmp.lt.u32.totalorder %s1937_s10, %s2118_s1  ;;  %p1636_p10 = scmp.lt.u32.totalorder %s1634_s20, %s1629_s30 }
  0x5c   : > { %p1632_p7 = pnand %p1630_p12, %p1601_p6  ;;  %p1638_p4 = scmp.lt.u32.totalorder %s1629_s30, %s1937_s10 }
  0x5d   : > { %p1637_p1 = por %p1636_p10, %p1635_p9 }
  0x5e   : > { %p1633_p8 = pneg %p1632_p7 }
  0x5f   : > { %p1639_p0 = por %p1638_p4, %p1637_p1 }
  0x61   : > { %p1640_p5 = pnand %p1639_p0, %p1633_p8 }
  0x63   : > { %1643 = shalt.err (!%p1640_p5)
}
  0x64   : > { %s1644_s3 = scalar_lea.vmem %s1940_s0, 1024  ;;  %s1742_s8 = smov [#allocation5]  }
  0x65   : > { %p1645_p11 = scmp.ne.s32.totalorder %s1940_s0, %s1644_s3  ;;  %s1649_s11 = sshll.u32 %s1742_s8, 4  ;;  %s1650_s11 = int_to_ptr.vmem [resolvable:$false] %s1649_s11 }
  0x66   : > { %s1651_s9 = scalar_lea.vmem %s1650_s11, 2048  ;;  %p1652_p12 = scmp.lt.s32.totalorder %s1940_s0, %s1650_s11 }
  0x67   : > { %p1647_p13 = pnand %p1645_p11, %p1601_p6  ;;  %p1653_p7 = scmp.lt.s32.totalorder %s1651_s9, %s1644_s3 }
  0x69   : > { %p1648_p2 = pneg %p1647_p13  ;;  %p1654_p9 = por %p1653_p7, %p1652_p12 }
  0x6b   : > { %p1655_p10 = pnand %p1654_p9, %p1648_p2 }
  0x6d   : > { %1658 = shalt.err (!%p1655_p10)
}
  0x6e   : > { %1461 = dma.hbm_to_vmem [thread:$0]  (!%p1884_p3), %s1937_s10, 1024, %s1940_s0, %s1943_s26, %s1739_s21, %s1740_s22, %s1741_s23  }
  0x6f   : > { %p2150_p6 = scmp.ne.s32.totalorder %s2142_s15, 0 }
  0x70   : > { %s1975_s30 = sand.u32 (!%p2150_p6), 1, %s1725_s25   ;;  %p2151_p8 = scmp.ne.s32.totalorder (!%p2150_p6), %s2139_s12, 0 }
  0x71   : > { %296 = sbr.rel (%p2150_p6) target bundleno = 883 (0x373), region = 48  ;;  %s1338_s18 = sshll.u32 (!%p2150_p6), %s1975_s30, 6 }
  0x72   : > { %s299_s17 = scalar_lea.sflag (!%p2150_p6), [#allocation3], %s1975_s30  ;;  %s1979_s20 = scalar_lea.vmem (!%p2150_p6), [#allocation2], %s1338_s18 }
  0x78   : > { %1704 = dma.done.wait (%p2151_p8), %s299_s17, 1024  }
  0x79   : > { %1706 = vsyncadd (%p2151_p8), %s299_s17, 4294966272  ;;  %s307_s0 = sand.u32 1, %s1810_s28   ;;  %s311_s15 = scalar_lea.vmem [#allocation5], %s1338_s18 }
  0x7a   : > { %s308_s26 = scalar_lea.sflag [#allocation6], %s307_s0 }
  0x7b   : > { %1708 = dma.done.wait (%p2151_p8), %s308_s26, 1024  }
  0x7c   : > { %1710 = vsyncadd (%p2151_p8), %s308_s26, 4294966272  ;;  %p2152_p3 = scmp.eq.s32.totalorder %s1810_s28, 0 }
  0x7e   : > { %1712 = dma.done.wait (%p2152_p3), [#allocation6], 256   ;;  %p2153_p1 = pmov %p2152_p3 }
  0x7f   : > { %v1743_v0 = vmov 0   ;;  %v1519_v1 = vld [vmem:[%s311_s15 + $0x4] ss:$16 sps:$4 sm:$0xff]   ;;  %v1521_v2 = vld [vmem:[%s311_s15 + $0xc] ss:$16 sps:$4 sm:$0xff]   ;;  %vm433_vm0 = vcmask 261120  }
  0x80   : > { %1714 = vsyncadd (%p2153_p1), [#allocation6], 4294967040  ;;  %472 = vmatprep.mubr.bf16.mxu0 %v1743_v0  ;;  %525 = vmatprep.mubr.bf16.mxu1 %v1743_v0  ;;  %v1523_v3 = vld [vmem:[%s311_s15] ss:$16 sps:$4 sm:$0xff]   ;;  %v1524_v4 = vld [vmem:[%s311_s15 + $0x8] ss:$16 sps:$4 sm:$0xff]  }
  0x81   : > { %1513 = vset.pattern.permute.xlu0 %v1743_v0  ;;  %1514 = vset.pattern.permute.xlu1 %v1743_v0  ;;  %v1525_v5 = vld [vmem:[%s311_s15 + $0x24] ss:$16 sps:$4 sm:$0xff]   ;;  %v1527_v6 = vld [vmem:[%s311_s15 + $0x2c] ss:$16 sps:$4 sm:$0xff]   ;;  %v1529_v7 = vld [vmem:[%s311_s15 + $0x20] ss:$16 sps:$4 sm:$0xff]  }
  0x82   : > { %440 = vmatprep.subr.bf16.mxu0 %v1519_v1  ;;  %493 = vmatprep.subr.bf16.mxu1 %v1521_v2  ;;  %v1530_v8 = vld [vmem:[%s311_s15 + $0x28] ss:$16 sps:$4 sm:$0xff]   ;;  %v1531_v9 = vld [vmem:[#allocation7] sm:$0xff]   ;;  %v1537_v13 = vld [vmem:[%s1979_s20 + $0xc] ss:$16 sps:$4 sm:$0xff]   ;;  %v1744_v25 = vmov 0.0  }
  0x83   : > { %441 = vmatpush1.bf16.msra.mxu0 %v1523_v3  ;;  %494 = vmatpush1.bf16.msra.mxu1 %v1524_v4  ;;  %v1532_v10 = vld [vmem:[%s1979_s20] ss:$16 sps:$4 sm:$0xff]   ;;  %v1534_v11 = vld [vmem:[%s1979_s20 + $0x4] ss:$16 sps:$4 sm:$0xff]   ;;  %v1535_v12 = vld [vmem:[%s1979_s20 + $0x8] ss:$16 sps:$4 sm:$0xff]  }
  0x84   : > { %442 = vmatprep.subr.bf16.mxu0 %v1525_v5  ;;  %495 = vmatprep.subr.bf16.mxu1 %v1527_v6  ;;  %v1539_v14 = vld [vmem:[%s1979_s20 + $0x20] ss:$16 sps:$4 sm:$0xff]   ;;  %v1541_v15 = vld [vmem:[%s1979_s20 + $0x24] ss:$16 sps:$4 sm:$0xff]   ;;  %v1542_v16 = vld [vmem:[%s1979_s20 + $0x28] ss:$16 sps:$4 sm:$0xff]  }
  0x85   : > { %v1544_v17 = vld [vmem:[%s1979_s20 + $0x2c] ss:$16 sps:$4 sm:$0xff]   ;;  %v2007_v18 = vld [vmem:[%s2123_s6] sm:$0xff]  ;;  %v357_v20 = vld [vmem:[%s2123_s6 + $0x10] sm:$0xff]  ;;  %v1745_v26 = vmov 1   ;;  %s1341_s23 = sshll.u32 %s1975_s30, 4 }
  0x86   : > { %v1538_v19 = vld [vmem:[#allocation7 + $0x8] sm:$0xff]   ;;  %710 = vperm.xlu0 %1513, %v2007_v18   ;;  %720 = vperm.xlu1 %1514, %v357_v20   ;;  %v358_v22 = vld [vmem:[%s2123_s6 + $0x18] sm:$0xff]  ;;  %v1545_v23 = vld [vmem:[%s2119_s2] sm:$0xff]   ;;  %s1392_s10 = sshll.u32 %s1810_s28, 8  ;;  %s350_s16 = scalar_lea.vmem [#allocation8], %s1341_s23 }
  0x87   : > { %443 = vmatpush1.bf16.msra.mxu0 %v1529_v7  ;;  %496 = vmatpush1.bf16.msra.mxu1 %v1530_v8  ;;  %v356_v21 = vld [vmem:[%s2123_s6 + $0x8] sm:$0xff]  ;;  %s1225_s19 = sshll.u32 %s350_s16, 4  ;;  %s2073_s11 = scalar_lea.hbm %s2124_s7, %s1392_s10  ;;  %s2075_s19 = int_to_ptr.vmem [resolvable:$true] %s1225_s19 }
  0x88   : > { %602 = vmatprep.subr.bf16.mxu0 %v1534_v11  ;;  %655 = vmatprep.subr.bf16.mxu1 %v1537_v13  ;;  %v1546_v24 = vld [vmem:[%s2119_s2 + $0x8] sm:$0xff]   ;;  %s1211_s28 = scalar_lea.sflag [#allocation4], %s1975_s30  ;;  %s1659_s9 = scalar_lea.vmem %s2075_s19, 256 }
  0x89   : > { %p1660_p4 = scmp.ne.s32.totalorder %s2075_s19, %s1659_s9  ;;  %p2154_p0 = scmp.ne.s32.totalorder %s2140_s13, 0 }
  0x8a   : > { %1352 = vmatmul.mubr.msk.bf16.vlgmr.msra.gmra.mrb[0].mxu0 %vm433_vm0, %v1531_v9  ;;  %1354 = vmatmul.mubr.msk.bf16.vlgmr.msra.gmra.mrb[0].mxu1 %vm433_vm0, %v1531_v9  ;;  %s1748_s18 = smov [#allocation8]  }
  0x8b   : > { %603 = vmatpush1.bf16.msra.mxu0 %v1532_v10  ;;  %656 = vmatpush1.bf16.msra.mxu1 %v1535_v12  ;;  %p1661_p5 = pnand %p1660_p4, %p2154_p0  ;;  %s1663_s17 = sshll.u32 %s1748_s18, 4  ;;  %s1664_s17 = int_to_ptr.vmem [resolvable:$false] %s1663_s17 }
  0x8c   : > { %482 = vmatprep.mubr.bf16.mxu0 %v1743_v0  ;;  %535 = vmatprep.mubr.bf16.mxu1 %v1743_v0  ;;  %s1665_s20 = scalar_lea.vmem %s1664_s17, 512  ;;  %p1666_p13 = scmp.lt.s32.totalorder %s2075_s19, %s1664_s17 }
  0x8d   : > { %604 = vmatprep.subr.bf16.mxu0 %v1541_v15  ;;  %657 = vmatprep.subr.bf16.mxu1 %v1544_v17  ;;  %p1662_p11 = pneg %p1661_p5  ;;  %p1667_p2 = scmp.lt.s32.totalorder %s1665_s20, %s1659_s9 }
  0x8e   : > { %715 = vperm.xlu0 %1513, %v356_v21   ;;  %725 = vperm.xlu1 %1514, %v358_v22  }
  0x8f   : > { %605 = vmatpush1.bf16.msra.mxu0 %v1539_v14  ;;  %658 = vmatpush1.bf16.msra.mxu1 %v1542_v16  ;;  %p1668_p12 = por %p1667_p2, %p1666_p13 }
  0x91   : > { %p1669_p7 = pnand %p1668_p12, %p1662_p11 }
  0x92   : > { %1353 = vmatmul.mubr.msk.bf16.gmra.mrb[4].mxu0 %vm433_vm0, %v1538_v19  ;;  %1355 = vmatmul.mubr.msk.bf16.gmra.mrb[4].mxu1 %vm433_vm0, %v1538_v19 }
  0x93   : > { %634 = vmatprep.mubr.bf16.mxu0 %v1743_v0  ;;  %687 = vmatprep.mubr.bf16.mxu1 %v1743_v0 }
  0x94   : > { %1515 = vset.pattern.permute.xlu0 %v1745_v26  ;;  %1516 = vset.pattern.permute.xlu1 %v1745_v26  ;;  %v761_v26 = vld [vmem:[%s2121_s4 + $0x8] sm:$0xff] }
  0x95   : > { %765 = vperm.xlu0 %1515, %v2007_v18   ;;  %769 = vperm.xlu1 %1516, %v356_v21  }
  0x99   : > { %773 = vperm.xlu1 %1516, %v357_v20   ;;  %777 = vperm.xlu0 %1515, %v358_v22  }
  0x9a   : > { %1366 = vmatmul.mubr.msk.bf16.vlgmr.msra.gmra.mrb[0].mxu0 %vm433_vm0, %v1545_v23  ;;  %1368 = vmatmul.mubr.msk.bf16.vlgmr.msra.gmra.mrb[0].mxu1 %vm433_vm0, %v1545_v23 }
  0x9b   : > { %644 = vmatprep.mubr.bf16.mxu0 %v1743_v0  ;;  %697 = vmatprep.mubr.bf16.mxu1 %v1743_v0 }
  0xa2   : > { %1367 = vmatmul.mubr.msk.bf16.gmra.mrb[4].mxu0 %vm433_vm0, %v1546_v24  ;;  %1369 = vmatmul.mubr.msk.bf16.gmra.mrb[4].mxu1 %vm433_vm0, %v1546_v24  ;;  %v760_v24 = vld [vmem:[%s2121_s4] sm:$0xff] }
  0xa3   : > { %856 = vmatprep.mubr.f32.mxu0 %v1744_v25  ;;  %945 = vmatprep.mubr.f32.mxu1 %v1744_v25 }
 0x105   : > { %v711_v27 = vpop.permute.xlu0 %710  ;;  %v721_v29 = vpop.permute.xlu1 %720 }
 0x10d   : > { %v716_v28 = vpop.permute.xlu0 %715  ;;  %v726_v56 = vpop.permute.xlu1 %725 }
 0x16d   : > { %v636_v30 = vpop.f32.mrb[0].mxu0  ;;  %v689_v31 = vpop.f32.mrb[0].mxu1 }
 0x16e   : > { %v728_v32 = vadd.f32 %v711_v27, %v636_v30  ;;  %v730_v33 = vadd.f32 %v711_v27, %v689_v31  ;;  %v638_v34 = vpop.f32.mrb[1].mxu0  ;;  %v691_v35 = vpop.f32.mrb[1].mxu1 }
 0x16f   : > { %v729_v36 = vadd.f32 %v711_v27, %v638_v34  ;;  %v731_v37 = vadd.f32 %v711_v27, %v691_v35  ;;  %v640_v38 = vpop.f32.mrb[2].mxu0  ;;  %v693_v39 = vpop.f32.mrb[2].mxu1  ;;  %v762_v27 = vld [vmem:[%s2121_s4 + $0x10] sm:$0xff] }
 0x170   : > { %v732_v40 = vadd.f32 %v716_v28, %v640_v38  ;;  %v734_v41 = vadd.f32 %v716_v28, %v693_v39  ;;  %v642_v42 = vpop.f32.mrb[3].mxu0  ;;  %v695_v43 = vpop.f32.mrb[3].mxu1  ;;  %v744_v46 = vmax.f32 %v728_v32, 0.0  ;;  %v746_v47 = vmax.f32 %v730_v33, 0.0 }
 0x171   : > { %v733_v44 = vadd.f32 %v716_v28, %v642_v42  ;;  %v735_v45 = vadd.f32 %v716_v28, %v695_v43  ;;  %v745_v50 = vmax.f32 %v729_v36, 0.0  ;;  %v747_v51 = vmax.f32 %v731_v37, 0.0  ;;  %v763_v28 = vld [vmem:[%s2121_s4 + $0x18] sm:$0xff]  ;;  %v766_v30 = vpop.permute.xlu0 %765  ;;  %v770_v31 = vpop.permute.xlu1 %769 }
 0x172   : > { %v748_v48 = vmax.f32 %v732_v40, 0.0  ;;  %v750_v49 = vmax.f32 %v734_v41, 0.0 }
 0x173   : > { %v749_v52 = vmax.f32 %v733_v44, 0.0  ;;  %v751_v53 = vmax.f32 %v735_v45, 0.0 }
 0x174   : > { %v1395_v54 = vpack.c.bf16 %v748_v48, %v744_v46  ;;  %v1403_v55 = vpack.c.bf16 %v750_v49, %v746_v47 }
 0x175   : > { %v1393_v57 = vpack.c.bf16 %v749_v52, %v745_v50  ;;  %v1401_v58 = vpack.c.bf16 %v751_v53, %v747_v51  ;;  %v646_v59 = vpop.f32.mrb[4].mxu0  ;;  %v699_v60 = vpop.f32.mrb[4].mxu1 }
 0x176   : > { %v736_v61 = vadd.f32 %v721_v29, %v646_v59  ;;  %v738_v62 = vadd.f32 %v721_v29, %v699_v60  ;;  %v648_v63 = vpop.f32.mrb[5].mxu0  ;;  %v701_v0 = vpop.f32.mrb[5].mxu1 }
 0x177   : > { %v737_v1 = vadd.f32 %v721_v29, %v648_v63  ;;  %v739_v2 = vadd.f32 %v721_v29, %v701_v0  ;;  %v650_v3 = vpop.f32.mrb[6].mxu0  ;;  %v703_v4 = vpop.f32.mrb[6].mxu1  ;;  %1394 = vmatprep.subr.bf16.mxu0 %v1393_v57  ;;  %1402 = vmatprep.subr.bf16.mxu1 %v1401_v58  ;;  %v1746_v29 = vmov 2  }
 0x178   : > { %v740_v5 = vadd.f32 %v726_v56, %v650_v3  ;;  %v742_v6 = vadd.f32 %v726_v56, %v703_v4  ;;  %v652_v7 = vpop.f32.mrb[7].mxu0  ;;  %v705_v8 = vpop.f32.mrb[7].mxu1  ;;  %1396 = vmatpush1.bf16.msra.mxu0 %v1395_v54  ;;  %1404 = vmatpush1.bf16.msra.mxu1 %v1403_v55  ;;  %v752_v11 = vmax.f32 %v736_v61, 0.0  ;;  %v754_v12 = vmax.f32 %v738_v62, 0.0 }
 0x179   : > { %v741_v9 = vadd.f32 %v726_v56, %v652_v7  ;;  %v743_v10 = vadd.f32 %v726_v56, %v705_v8  ;;  %v753_v15 = vmax.f32 %v737_v1, 0.0  ;;  %v755_v16 = vmax.f32 %v739_v2, 0.0  ;;  %1517 = vset.pattern.permute.xlu1 %v1746_v29  ;;  %1518 = vset.pattern.permute.xlu0 %v1746_v29  ;;  %v774_v50 = vpop.permute.xlu1 %773  ;;  %v778_v63 = vpop.permute.xlu0 %777 }
 0x17a   : > { %v756_v13 = vmax.f32 %v740_v5, 0.0  ;;  %v758_v14 = vmax.f32 %v742_v6, 0.0  ;;  %988 = vperm.xlu1 %1517, %v2007_v18  }
 0x17b   : > { %v757_v17 = vmax.f32 %v741_v9, 0.0  ;;  %v759_v19 = vmax.f32 %v743_v10, 0.0 }
 0x17c   : > { %v1399_v20 = vpack.c.bf16 %v756_v13, %v752_v11  ;;  %v1407_v21 = vpack.c.bf16 %v758_v14, %v754_v12 }
 0x17d   : > { %v1397_v22 = vpack.c.bf16 %v757_v17, %v753_v15  ;;  %v1405_v23 = vpack.c.bf16 %v759_v19, %v755_v16 }
 0x17f   : > { %1398 = vmatprep.subr.bf16.mxu0 %v1397_v22  ;;  %1406 = vmatprep.subr.bf16.mxu1 %v1405_v23 }
 0x180   : > { %1400 = vmatpush1.bf16.msra.mxu0 %v1399_v20  ;;  %1408 = vmatpush1.bf16.msra.mxu1 %v1407_v21 }
 0x183   : > { %1370 = vmatmul.mubr.msk.f32.vlgmr.msra.gmra.mrb[8].mxu0 %vm433_vm0, %v760_v24  ;;  %1374 = vmatmul.mubr.msk.f32.vlgmr.msra.gmra.mrb[8].mxu1 %vm433_vm0, %v760_v24 }
 0x184   : > { %862 = vmatprep.mubr.f32.mxu0 %v1744_v25  ;;  %951 = vmatprep.mubr.f32.mxu1 %v1744_v25 }
 0x187   : > { %1371 = vmatmul.mubr.msk.f32.gmra.mrb[10].mxu0 %vm433_vm0, %v761_v26  ;;  %1375 = vmatmul.mubr.msk.f32.gmra.mrb[10].mxu1 %vm433_vm0, %v761_v26  ;;  %v986_v26 = vld [vmem:[%s2122_s5] sm:$0xf] }
 0x188   : > { %868 = vmatprep.mubr.f32.mxu0 %v1744_v25  ;;  %957 = vmatprep.mubr.f32.mxu1 %v1744_v25 }
 0x18b   : > { %1372 = vmatmul.mubr.msk.f32.gmra.mrb[12].mxu0 %vm433_vm0, %v762_v27  ;;  %1376 = vmatmul.mubr.msk.f32.gmra.mrb[12].mxu1 %vm433_vm0, %v762_v27 }
 0x18c   : > { %874 = vmatprep.mubr.f32.mxu0 %v1744_v25  ;;  %963 = vmatprep.mubr.f32.mxu1 %v1744_v25 }
 0x18f   : > { %1373 = vmatmul.mubr.msk.f32.gmra.mrb[14].mxu0 %vm433_vm0, %v763_v28  ;;  %1377 = vmatmul.mubr.msk.f32.gmra.mrb[14].mxu1 %vm433_vm0, %v763_v28 }
 0x190   : > { %1058 = vmatprep.mubr.f32.mxu0 %v1744_v25  ;;  %1129 = vmatprep.mubr.f32.mxu1 %v1744_v25 }
 0x1f9   : > { %v989_v27 = vpop.permute.xlu1 %988 }
 0x256   : > { %v858_v32 = vpop.f32.mrb[8].mxu0  ;;  %v947_v33 = vpop.f32.mrb[8].mxu1 }
 0x257   : > { %v860_v34 = vpop.f32.mrb[9].mxu0  ;;  %v949_v35 = vpop.f32.mrb[9].mxu1  ;;  %v859_v36 = vadd.f32 %v858_v32, %v766_v30  ;;  %v948_v37 = vadd.f32 %v947_v33, %v766_v30 }
 0x258   : > { %v861_v38 = vadd.f32 %v860_v34, %v766_v30  ;;  %v950_v39 = vadd.f32 %v949_v35, %v766_v30 }
 0x259   : > { %v970_v47 = vmax.f32 %v859_v36, 0.0  ;;  %v972_v48 = vmax.f32 %v948_v37, 0.0 }
 0x25a   : > { %v864_v40 = vpop.f32.mrb[10].mxu0  ;;  %v953_v41 = vpop.f32.mrb[10].mxu1  ;;  %v971_v51 = vmax.f32 %v861_v38, 0.0  ;;  %v973_v52 = vmax.f32 %v950_v39, 0.0 }
 0x25b   : > { %v865_v42 = vadd.f32 %v864_v40, %v770_v31  ;;  %v954_v43 = vadd.f32 %v953_v41, %v770_v31  ;;  %v866_v25 = vpop.f32.mrb[11].mxu0  ;;  %v955_v44 = vpop.f32.mrb[11].mxu1  ;;  %v1747_v40 = vmov 1966171168  }
 0x25c   : > { %v867_v45 = vadd.f32 %v866_v25, %v770_v31  ;;  %v956_v46 = vadd.f32 %v955_v44, %v770_v31  ;;  %v1181_v41 = vunpack.c.l.s4 %v1747_v40 }
 0x25d   : > { %v974_v18 = vmax.f32 %v865_v42, 0.0  ;;  %v976_v49 = vmax.f32 %v954_v43, 0.0  ;;  %v1183_v42 = vlaneseq }
 0x25e   : > { %v975_v53 = vmax.f32 %v867_v45, 0.0  ;;  %v977_v54 = vmax.f32 %v956_v46, 0.0  ;;  %v870_v55 = vpop.f32.mrb[12].mxu0  ;;  %v959_v56 = vpop.f32.mrb[12].mxu1  ;;  %v1182_v25 = vunpack.c.0.s8 %v1181_v41 }
 0x25f   : > { %v1411_v57 = vpack.c.bf16 %v974_v18, %v970_v47  ;;  %v1419_v58 = vpack.c.bf16 %v976_v49, %v972_v48  ;;  %v872_v59 = vpop.f32.mrb[13].mxu0  ;;  %v961_v60 = vpop.f32.mrb[13].mxu1  ;;  %v871_v0 = vadd.f32 %v870_v55, %v774_v50  ;;  %v960_v1 = vadd.f32 %v959_v56, %v774_v50 }
 0x260   : > { %v1409_v61 = vpack.c.bf16 %v975_v53, %v971_v51  ;;  %v1417_v62 = vpack.c.bf16 %v977_v54, %v973_v52  ;;  %v873_v2 = vadd.f32 %v872_v59, %v774_v50  ;;  %v962_v3 = vadd.f32 %v961_v60, %v774_v50 }
 0x261   : > { %v978_v12 = vmax.f32 %v871_v0, 0.0  ;;  %v980_v13 = vmax.f32 %v960_v1, 0.0  ;;  %v1184_v44 = vshrl.u32 %v1183_v42, 7  ;;  %vm1206_vm1 = vcmp.lt.s32.totalorder %v1183_v42, 512 }
 0x262   : > { %v876_v4 = vpop.f32.mrb[14].mxu0  ;;  %v965_v5 = vpop.f32.mrb[14].mxu1  ;;  %1410 = vmatprep.subr.bf16.mxu0 %v1409_v61  ;;  %1418 = vmatprep.subr.bf16.mxu1 %v1417_v62  ;;  %v979_v16 = vmax.f32 %v873_v2, 0.0  ;;  %v981_v17 = vmax.f32 %v962_v3, 0.0 }
 0x263   : > { %v877_v6 = vadd.f32 %v876_v4, %v778_v63  ;;  %v966_v7 = vadd.f32 %v965_v5, %v778_v63  ;;  %v878_v8 = vpop.f32.mrb[15].mxu0  ;;  %v967_v9 = vpop.f32.mrb[15].mxu1  ;;  %1412 = vmatpush1.bf16.msra.mxu0 %v1411_v57  ;;  %1420 = vmatpush1.bf16.msra.mxu1 %v1419_v58  ;;  %v1185_v50 = vsub.s32 %v1182_v25, %v1184_v44 }
 0x264   : > { %v879_v10 = vadd.f32 %v878_v8, %v778_v63  ;;  %v968_v11 = vadd.f32 %v967_v9, %v778_v63 }
 0x265   : > { %v982_v14 = vmax.f32 %v877_v6, 0.0  ;;  %v984_v15 = vmax.f32 %v966_v7, 0.0 }
 0x266   : > { %v983_v19 = vmax.f32 %v879_v10, 0.0  ;;  %v985_v20 = vmax.f32 %v968_v11, 0.0 }
 0x267   : > { %v1415_v21 = vpack.c.bf16 %v982_v14, %v978_v12  ;;  %v1423_v22 = vpack.c.bf16 %v984_v15, %v980_v13 }
 0x268   : > { %v1413_v23 = vpack.c.bf16 %v983_v19, %v979_v16  ;;  %v1421_v24 = vpack.c.bf16 %v985_v20, %v981_v17 }
 0x26a   : > { %1414 = vmatprep.subr.bf16.mxu0 %v1413_v23  ;;  %1422 = vmatprep.subr.bf16.mxu1 %v1421_v24 }
 0x26b   : > { %1416 = vmatpush1.bf16.msra.mxu0 %v1415_v21  ;;  %1424 = vmatpush1.bf16.msra.mxu1 %v1423_v22 }
 0x26e   : > { %1378 = vmatmul.mubr.msk.f32.vlgmr.msra.gmra.mrb[16].mxu0 %vm433_vm0, %v986_v26  ;;  %1379 = vmatmul.mubr.msk.f32.vlgmr.msra.gmra.mrb[16].mxu1 %vm433_vm0, %v986_v26 }
 0x341   : > { %v1060_v28 = vpop.f32.mrb[16].mxu0  ;;  %v1131_v29 = vpop.f32.mrb[16].mxu1 }
 0x342   : > { %v1061_v30 = vadd.f32 %v1060_v28, %v989_v27  ;;  %v1132_v31 = vadd.f32 %v1131_v29, %v989_v27  ;;  %v1062_v32 = vpop.f32.mrb[17].mxu0  ;;  %v1133_v33 = vpop.f32.mrb[17].mxu1 }
 0x343   : > { %v1063_v34 = vadd.f32 %v1062_v32, %v989_v27  ;;  %v1134_v35 = vadd.f32 %v1133_v33, %v989_v27 }
 0x344   : > { %v1380_v36 = vmul.f32 -1.442695, %v1061_v30  ;;  %v1382_v37 = vmul.f32 -1.442695, %v1132_v31  ;;  %1547 = vtanh.f32 %v1061_v30 }
 0x345   : > { %1549 = vtanh.f32 %v1132_v31  ;;  %v1381_v38 = vmul.f32 -1.442695, %v1063_v34  ;;  %v1383_v39 = vmul.f32 -1.442695, %v1134_v35 }
 0x346   : > { %1551 = vpow2.f32 %v1380_v36 }
 0x347   : > { %1553 = vpow2.f32 %v1382_v37 }
 0x348   : > { %1555 = vpow2.f32 %v1381_v38 }
 0x349   : > { %1557 = vtanh.f32 %v1063_v34 }
 0x34a   : > { %1559 = vpow2.f32 %v1383_v39 }
 0x34b   : > { %1561 = vtanh.f32 %v1134_v35 }
 0x34e   : > { %v1548_v43 = vpop.eup %1547 }
 0x34f   : > { %v1550_v45 = vpop.eup %1549 }
 0x350   : > { %v1552_v46 = vpop.eup %1551 }
 0x351   : > { %v1554_v47 = vpop.eup %1553  ;;  %v1148_v18 = vadd.f32 1.0, %v1552_v46 }
 0x352   : > { %v1556_v48 = vpop.eup %1555  ;;  %v1150_v49 = vadd.f32 1.0, %v1554_v47 }
 0x353   : > { %v1558_v51 = vpop.eup %1557  ;;  %1563 = vrcp.f32 %v1148_v18  ;;  %v1149_v52 = vadd.f32 1.0, %v1556_v48 }
 0x354   : > { %v1560_v53 = vpop.eup %1559  ;;  %1565 = vrcp.f32 %v1150_v49  ;;  %v1178_v54 = vcombine.low %v1548_v43, %v1558_v51 }
 0x355   : > { %v1562_v55 = vpop.eup %1561  ;;  %1567 = vrcp.f32 %v1149_v52  ;;  %v1151_v56 = vadd.f32 1.0, %v1560_v53 }
 0x356   : > { %v1186_v57 = vrot.slane %v1178_v54, %v1185_v50  ;;  %v1179_v58 = vcombine.low %v1550_v45, %v1562_v55 }
 0x357   : > { %1569 = vrcp.f32 %v1151_v56 }
 0x358   : > { %v1193_v59 = vrot.slane %v1179_v58, %v1185_v50 }
 0x35a   : > { %v1194_v60 = vcombine.high %v1186_v57, %v1193_v59 }
 0x35c   : > { %v1201_v0 = vrot.slane %v1194_v60, %v1185_v50 }
 0x35d   : > { %v1564_v61 = vpop.eup %1563 }
 0x35e   : > { %v1566_v62 = vpop.eup %1565  ;;  %v1202_v4 = vcombine.high %v1201_v0, %v1201_v0 }
 0x35f   : > { %v1568_v63 = vpop.eup %1567 }
 0x360   : > { %v1164_v1 = vcombine.low %v1564_v61, %v1568_v63 }
 0x361   : > { %v1570_v2 = vpop.eup %1569 }
 0x362   : > { %v1165_v3 = vcombine.low %v1566_v62, %v1570_v2  ;;  %1168 = vst [vmem:[%s350_s16] sm:$0xff] %v1164_v1 }
 0x364   : > { %1169 = vst [vmem:[%s350_s16 + $0x8] sm:$0xff] %v1165_v3 }
 0x365   : > { %1384 = vst.msk [vmem:[%s350_s16 + $0x3] ss:$4 sm:$0xf] %vm1206_vm1, %v1202_v4 }
 0x366   : > { %1672 = shalt.err (!%p1669_p7)
}
 0x367   : > { %s1673_s30 = scalar_lea.hbm %s2073_s11, 256  ;;  %s1677_s15 = scalar_lea.hbm %s2124_s7, 512 }
 0x368   : > { %p1674_p9 = scmp.ne.s32.totalorder %s2073_s11, %s1673_s30  ;;  %p1678_p8 = scmp.lt.u32.totalorder %s2073_s11, %s2124_s7 }
 0x369   : > { %p1679_p3 = scmp.lt.u32.totalorder %s1677_s15, %s1673_s30  ;;  %p1681_p4 = scmp.lt.u32.totalorder %s1673_s30, %s2073_s11 }
 0x36a   : > { %p1675_p10 = pnand %p1674_p9, %p2154_p0 }
 0x36b   : > { %p1680_p1 = por %p1679_p3, %p1678_p8 }
 0x36c   : > { %p1676_p6 = pneg %p1675_p10 }
 0x36d   : > { %p1682_p5 = por %p1681_p4, %p1680_p1 }
 0x36f   : > { %p1683_p11 = pnand %p1682_p5, %p1676_p6 }
 0x371   : > { %1686 = shalt.err (!%p1683_p11)
}
 0x372   : > { %1449 = dma.vmem_to_hbm [thread:$0]  (%p2154_p0), %s2075_s19, 256, %s2073_s11, %s1211_s28  }
 0x373 PF: > { %s1237_s21 = sand.u32 1, %s1721_s24   ;;  %p2155_p13 = scmp.ne.s32.totalorder %s2141_s14, 0 }
 0x374   : > { %p2156_p2 = scmp.ge.s32.totalorder %s1733_s27, 2  ;;  %s1238_s22 = scalar_lea.sflag [#allocation4], %s1237_s21 }
 0x376   : > { %p1463_p12 = pnand %p2156_p2, %p2155_p13 }
 0x378   : > { %1716 = dma.done.wait (!%p1463_p12), %s1238_s22, 256  }
 0x379   : > { %1718 = vsyncadd (!%p1463_p12), %s1238_s22, 4294967040  ;;  %s2157_s27 = sld [smem:[#allocation14_spill]]  ;;  %s2158_s23 = sld [smem:[#allocation13_spill]] }
 0x37a   : > { %s2159_s26 = sld [smem:[#allocation15_spill]]  ;;  %s2160_s24 = smov %s1725_s25 }
 0x37f   : > { %p23_p7 = scmp.ge.s32.totalorder %s2157_s27, 4   ;;  %s2161_s25 = smov %s2158_s23 }
 0x381   :  { %25 = sbr.rel (!%p23_p7) target bundleno = 10 (0xa), region = 111 }
 0x388   :  { %1243 = vsyncpa [#allocation3], 1 }
 0x389   :  { %1245 = vsyncpa [#allocation3 + $0x1], 1 }
 0x38a   :  { %1246 = vsyncpa [#allocation6], 1 }
 0x38b   :  { %1248 = vsyncpa [#allocation6 + $0x1], 1 }
 0x38c   :  { %1249 = vsyncpa [#allocation4], 1 }
 0x38d   :  { %1251 = vsyncpa [#allocation4 + $0x1], 1 }

</bundles_post_ra>
